<compile_context>
chip_gen: v5e
topology: v5e:2x2
jax: 0.10.0
libtpu: 0.0.40
codegen_flags: <defaults>
</compile_context>

<pallas_src>
import functools

import jax
import jax.numpy as jnp
from jax.experimental import pallas as pl
from jax.experimental.pallas import tpu as pltpu


def _location_attention_kernel(enc_ref, mask_ref, out_ref,
                               acc_un_ref, acc_all_ref, cnt_ref,
                               *, seq_len, ts):
    """One (ts, B, TH) tile of encoder_output per grid step.

    enc_ref : (ts, B, TH)  encoder outputs (native dtype, bf16 stays bf16)
    mask_ref: (ts, B, 1)   integer mask, nonzero == masked
    out_ref : (B, TH)      context, written only at the last S step
    scratch : acc_un (B,TH) f32 sum over unmasked rows
              acc_all(B,TH) f32 sum over all in-bounds rows (fully-masked fallback)
              cnt    (B,1)  f32 number of unmasked rows
    """
    s = pl.program_id(1)
    n_s = pl.num_programs(1)

    @pl.when(s == 0)
    def _init():
        acc_un_ref[...] = jnp.zeros_like(acc_un_ref)
        acc_all_ref[...] = jnp.zeros_like(acc_all_ref)
        cnt_ref[...] = jnp.zeros_like(cnt_ref)

    enc = enc_ref[...]                           # (ts, B, TH)
    unmasked = mask_ref[...] == 0                # (ts, B, 1)

    if seq_len % ts != 0:
        # Trace-time branch: only emitted when the last S tile is partial.
        row = jax.lax.broadcasted_iota(jnp.int32, unmasked.shape, 0) + s * ts
        in_bounds = row < seq_len
        unmasked = jnp.logical_and(unmasked, in_bounds)
        enc_all = jnp.where(in_bounds, enc, jnp.zeros_like(enc))
    else:
        enc_all = enc

    # Lane-broadcast select (mask lane dim is 1), accumulate in f32 on the VPU.
    enc_un = jnp.where(unmasked, enc, jnp.zeros_like(enc))
    acc_un_ref[...] += jnp.sum(enc_un, axis=0, dtype=jnp.float32)
    acc_all_ref[...] += jnp.sum(enc_all, axis=0, dtype=jnp.float32)
    cnt_ref[...] += jnp.sum(unmasked.astype(jnp.float32), axis=0)

    @pl.when(s == n_s - 1)
    def _finalize():
        cnt = cnt_ref[...]                                      # (B, 1)
        has_any = cnt > 0.0
        mean_unmasked = acc_un_ref[...] * (1.0 / jnp.maximum(cnt, 1.0))
        mean_all = acc_all_ref[...] * jnp.float32(1.0 / seq_len)
        out_ref[...] = jnp.where(has_any, mean_unmasked, mean_all).astype(out_ref.dtype)


def location_attention(decoder_hidden, encoder_output, src_mask, dense_weight,
                       *, ts=None, th=None, interpret=False):
    """Pallas forward of LocationAttention.

    decoder_hidden: (L, B, H), encoder_output: (S, B, H), src_mask: (S, B),
    dense_weight: (1, H).  Returns the context vector (1, B, H).

    decoder_hidden / dense_weight are accepted for API parity with the torch
    module but cancel exactly under the softmax over S (constant logit), so
    they are never transferred to / touched by the kernel.
    """
    S, B, H = encoder_output.shape
    assert decoder_hidden.shape[-1] == H and dense_weight.shape == (1, H)

    # Integer mask as-is (no f32 cast); (S, B, 1) layout puts B on sublanes and
    # a size-1 lane dim so the in-kernel broadcast over H is lane-cheap.
    if src_mask.dtype == jnp.bool_:
        src_mask = src_mask.astype(jnp.int32)
    mask3 = src_mask.reshape(S, B, 1)

    itemsize = jnp.dtype(encoder_output.dtype).itemsize
    if ts is None:
        # ~2 MiB of encoder rows per tile; double-buffered by the pipeline this
        # stays far below the 32 MiB scoped VMEM limit on every chip (and the
        # 64 MiB physical VMEM on v7x).
        budget_rows = (2 * 1024 * 1024) // max(B * H * itemsize, 1)
        ts = max(1, min(S, budget_rows))
        if ts >= 8:
            ts = (ts // 8) * 8
    if th is None:
        th = 512 if (H > 512 and H % 512 == 0) else H

    n_s = pl.cdiv(S, ts)
    n_h = pl.cdiv(H, th)

    kernel = functools.partial(_location_attention_kernel, seq_len=S, ts=ts)

    ctx = pl.pallas_call(
        kernel,
        out_shape=jax.ShapeDtypeStruct((B, H), encoder_output.dtype),
        grid=(n_h, n_s),
        in_specs=[
            pl.BlockSpec((ts, B, th), lambda h, s: (s, 0, h)),   # encoder tiles
            pl.BlockSpec((ts, B, 1), lambda h, s: (s, 0, 0)),    # mask tiles
        ],
        out_specs=pl.BlockSpec((B, th), lambda h, s: (0, h)),
        scratch_shapes=[
            pltpu.VMEM((B, th), jnp.float32),   # sum over unmasked rows
            pltpu.VMEM((B, th), jnp.float32),   # sum over all rows (fallback)
            pltpu.VMEM((B, 1), jnp.float32),    # unmasked count
        ],
        compiler_params=pltpu.CompilerParams(
            dimension_semantics=("parallel", "arbitrary"),
            vmem_limit_bytes=32 * 1024 * 1024,
        ),
        interpret=interpret,
    )(encoder_output, mask3)

    return ctx.reshape(1, B, H)


def _reference(decoder_hidden, encoder_output, src_mask, dense_weight):
    # Pure-JAX reference mirroring the torch code op-for-op.
    dec = decoder_hidden[-1, :, :][None]                              # (1,B,H)
    dec = jnp.broadcast_to(dec, encoder_output.shape)                 # (S,B,H)
    att = jnp.einsum("sbh,oh->sbo", dec, dense_weight)                # (S,B,1)
    att = jnp.where(src_mask[:, :, None] != 0, -1e10, att)
    att = jax.nn.softmax(att, axis=0)
    ctx = jnp.sum(att * encoder_output, axis=0)                       # (B,H)
    return ctx[None]                                                  # (1,B,H)


if __name__ == "__main__":
    key = jax.random.PRNGKey(0)
    L, B, S, H = 2, 2, 8, 32

    k1, k2 = jax.random.split(key, 2)
    decoder_hidden = jax.random.normal(k1, (L, B, H), dtype=jnp.float32)
    encoder_output = jax.random.normal(k2, (S, B, H), dtype=jnp.float32)

    # Deterministic dense weight (nn.Linear(hidden_size, 1, bias=False).weight)
    dense_weight = ((jnp.arange(H, dtype=jnp.float32) / H) - 0.5).reshape(1, H) * 0.2

    # Mask: pad positions are nonzero (masked). Batch 0 length 6, batch 1 length 8.
    lengths = jnp.array([6, 8], dtype=jnp.int32)
    src_mask = (jnp.arange(S)[:, None] >= lengths[None, :]).astype(jnp.int32)  # (S,B)

    out = location_attention(decoder_hidden, encoder_output, src_mask, dense_weight)
    out = jax.block_until_ready(out)
    ref = _reference(decoder_hidden, encoder_output, src_mask, dense_weight)
    assert out.shape == (1, B, H)
    assert jnp.allclose(out, ref, atol=1e-5, rtol=1e-5), "mismatch vs reference"

    # Degenerate case: a fully-masked column degrades to uniform 1/S, same as torch.
    src_mask_full = src_mask.at[:, 0].set(1)
    out2 = jax.block_until_ready(
        location_attention(decoder_hidden, encoder_output, src_mask_full, dense_weight))
    ref2 = _reference(decoder_hidden, encoder_output, src_mask_full, dense_weight)
    assert jnp.allclose(out2, ref2, atol=1e-5, rtol=1e-5), "mismatch (fully-masked column)"

    print("KERNEL_OK")
</pallas_src>

<mosaic_0001>
module attributes {stable_mosaic.version = 11 : i64} {
  func.func @_location_attention_kernel(%arg0: i32, %arg1: i32, %arg2: memref<8x2x32xf32, #tpu.memory_space<vmem>>, %arg3: memref<8x2x1xi32, #tpu.memory_space<vmem>>, %arg4: memref<2x32xf32, #tpu.memory_space<vmem>>, %arg5: memref<2x32xf32, #tpu.memory_space<vmem>>, %arg6: memref<2x32xf32, #tpu.memory_space<vmem>>, %arg7: memref<2x1xf32, #tpu.memory_space<vmem>>) attributes {dimension_semantics = [#tpu.dimension_semantics<parallel>, #tpu.dimension_semantics<arbitrary>], iteration_bounds = array<i64: 1, 1>, scalar_prefetch = 0 : i64, scratch_operands = 3 : i64, tpu.core_type = #tpu.core_type<tc>, window_params = [{transform_indices = @transform_0, window_bounds = array<i64: 8, 2, 32>}, {transform_indices = @transform_1, window_bounds = array<i64: 8, 2, 1>}, {transform_indices = @transform_2, window_bounds = array<i64: 2, 32>}]} {
    %c0_i32 = arith.constant 0 : i32
    %0 = arith.cmpi eq, %arg1, %c0_i32 : i32
    %1 = arith.extui %0 : i1 to i32
    %c0_i32_0 = arith.constant 0 : i32
    %2 = arith.cmpi ne, %1, %c0_i32_0 : i32
    scf.if %2 {
      %cst_24 = arith.constant 0.000000e+00 : f32
      %28 = vector.broadcast %cst_24 : f32 to vector<2x32xf32>
      %c0_25 = arith.constant 0 : index
      %c0_26 = arith.constant 0 : index
      %29 = vector.load %arg5[%c0_25, %c0_26] : memref<2x32xf32, #tpu.memory_space<vmem>>, vector<2x32xf32>
      tpu.vector_store %arg5[%c0_25, %c0_26], %28 {strides = array<i32>} : memref<2x32xf32, #tpu.memory_space<vmem>>, vector<2x32xf32>,
      %cst_27 = arith.constant 0.000000e+00 : f32
      %30 = vector.broadcast %cst_27 : f32 to vector<2x32xf32>
      %c0_28 = arith.constant 0 : index
      %c0_29 = arith.constant 0 : index
      %31 = vector.load %arg6[%c0_28, %c0_29] : memref<2x32xf32, #tpu.memory_space<vmem>>, vector<2x32xf32>
      tpu.vector_store %arg6[%c0_28, %c0_29], %30 {strides = array<i32>} : memref<2x32xf32, #tpu.memory_space<vmem>>, vector<2x32xf32>,
      %cst_30 = arith.constant 0.000000e+00 : f32
      %32 = vector.broadcast %cst_30 : f32 to vector<2x1xf32>
      %c0_31 = arith.constant 0 : index
      %c0_32 = arith.constant 0 : index
      %33 = vector.load %arg7[%c0_31, %c0_32] : memref<2x1xf32, #tpu.memory_space<vmem>>, vector<2x1xf32>
      tpu.vector_store %arg7[%c0_31, %c0_32], %32 {strides = array<i32>} : memref<2x1xf32, #tpu.memory_space<vmem>>, vector<2x1xf32>,
    } else {
    }
    %c0 = arith.constant 0 : index
    %c0_1 = arith.constant 0 : index
    %c0_2 = arith.constant 0 : index
    %3 = vector.load %arg2[%c0, %c0_1, %c0_2] : memref<8x2x32xf32, #tpu.memory_space<vmem>>, vector<8x2x32xf32>
    %c0_3 = arith.constant 0 : index
    %c0_4 = arith.constant 0 : index
    %c0_5 = arith.constant 0 : index
    %4 = vector.load %arg3[%c0_3, %c0_4, %c0_5] : memref<8x2x1xi32, #tpu.memory_space<vmem>>, vector<8x2x1xi32>
    %c0_i32_6 = arith.constant 0 : i32
    %5 = vector.broadcast %c0_i32_6 : i32 to vector<8x2x1xi32>
    %6 = arith.cmpi eq, %4, %5 : vector<8x2x1xi32>
    %cst = arith.constant 0.000000e+00 : f32
    %7 = vector.broadcast %cst : f32 to vector<8x2x32xf32>
    %8 = vector.shape_cast %6 : vector<8x2x1xi1> to vector<8x2x1xi1>
    %9 = vector.broadcast %8 : vector<8x2x1xi1> to vector<8x2x32xi1>
    %10 = arith.select %9, %3, %7 : vector<8x2x32xi1>, vector<8x2x32xf32>
    %c0_7 = arith.constant 0 : index
    %c0_8 = arith.constant 0 : index
    %11 = vector.load %arg5[%c0_7, %c0_8] : memref<2x32xf32, #tpu.memory_space<vmem>>, vector<2x32xf32>
    %cst_9 = arith.constant dense<0.000000e+00> : vector<2x32xf32>
    %12 = vector.multi_reduction <add>, %10, %cst_9 [0] : vector<8x2x32xf32> to vector<2x32xf32>
    %13 = arith.addf %11, %12 : vector<2x32xf32>
    %c0_10 = arith.constant 0 : index
    %c0_11 = arith.constant 0 : index
    %14 = vector.load %arg5[%c0_10, %c0_11] : memref<2x32xf32, #tpu.memory_space<vmem>>, vector<2x32xf32>
    tpu.vector_store %arg5[%c0_10, %c0_11], %13 {strides = array<i32>} : memref<2x32xf32, #tpu.memory_space<vmem>>, vector<2x32xf32>,
    %c0_12 = arith.constant 0 : index
    %c0_13 = arith.constant 0 : index
    %15 = vector.load %arg6[%c0_12, %c0_13] : memref<2x32xf32, #tpu.memory_space<vmem>>, vector<2x32xf32>
    %cst_14 = arith.constant dense<0.000000e+00> : vector<2x32xf32>
    %16 = vector.multi_reduction <add>, %3, %cst_14 [0] : vector<8x2x32xf32> to vector<2x32xf32>
    %17 = arith.addf %15, %16 : vector<2x32xf32>
    %c0_15 = arith.constant 0 : index
    %c0_16 = arith.constant 0 : index
    %18 = vector.load %arg6[%c0_15, %c0_16] : memref<2x32xf32, #tpu.memory_space<vmem>>, vector<2x32xf32>
    tpu.vector_store %arg6[%c0_15, %c0_16], %17 {strides = array<i32>} : memref<2x32xf32, #tpu.memory_space<vmem>>, vector<2x32xf32>,
    %c0_17 = arith.constant 0 : index
    %c0_18 = arith.constant 0 : index
    %19 = vector.load %arg7[%c0_17, %c0_18] : memref<2x1xf32, #tpu.memory_space<vmem>>, vector<2x1xf32>
    %20 = arith.extui %6 : vector<8x2x1xi1> to vector<8x2x1xi32>
    %21 = arith.sitofp %20 : vector<8x2x1xi32> to vector<8x2x1xf32>
    %cst_19 = arith.constant dense<0.000000e+00> : vector<2x1xf32>
    %22 = vector.multi_reduction <add>, %21, %cst_19 [0] : vector<8x2x1xf32> to vector<2x1xf32>
    %23 = arith.addf %19, %22 : vector<2x1xf32>
    %c0_20 = arith.constant 0 : index
    %c0_21 = arith.constant 0 : index
    %24 = vector.load %arg7[%c0_20, %c0_21] : memref<2x1xf32, #tpu.memory_space<vmem>>, vector<2x1xf32>
    tpu.vector_store %arg7[%c0_20, %c0_21], %23 {strides = array<i32>} : memref<2x1xf32, #tpu.memory_space<vmem>>, vector<2x1xf32>,
    %c0_i32_22 = arith.constant 0 : i32
    %25 = arith.cmpi eq, %arg1, %c0_i32_22 : i32
    %26 = arith.extui %25 : i1 to i32
    %c0_i32_23 = arith.constant 0 : i32
    %27 = arith.cmpi ne, %26, %c0_i32_23 : i32
    scf.if %27 {
      %c0_24 = arith.constant 0 : index
      %c0_25 = arith.constant 0 : index
      %28 = vector.load %arg7[%c0_24, %c0_25] : memref<2x1xf32, #tpu.memory_space<vmem>>, vector<2x1xf32>
      %cst_26 = arith.constant 0.000000e+00 : f32
      %29 = vector.broadcast %cst_26 : f32 to vector<2x1xf32>
      %30 = arith.cmpf ogt, %28, %29 : vector<2x1xf32>
      %c0_27 = arith.constant 0 : index
      %c0_28 = arith.constant 0 : index
      %31 = vector.load %arg5[%c0_27, %c0_28] : memref<2x32xf32, #tpu.memory_space<vmem>>, vector<2x32xf32>
      %cst_29 = arith.constant 1.000000e+00 : f32
      %32 = vector.broadcast %cst_29 : f32 to vector<2x1xf32>
      %33 = arith.maximumf %28, %32 : vector<2x1xf32>
      %cst_30 = arith.constant 1.000000e+00 : f32
      %34 = vector.broadcast %cst_30 : f32 to vector<2x1xf32>
      %35 = arith.divf %34, %33 : vector<2x1xf32>
      %36 = vector.broadcast %35 : vector<2x1xf32> to vector<2x32xf32>
      %37 = arith.mulf %31, %36 : vector<2x32xf32>
      %c0_31 = arith.constant 0 : index
      %c0_32 = arith.constant 0 : index
      %38 = vector.load %arg6[%c0_31, %c0_32] : memref<2x32xf32, #tpu.memory_space<vmem>>, vector<2x32xf32>
      %cst_33 = arith.constant 1.250000e-01 : f32
      %39 = vector.broadcast %cst_33 : f32 to vector<2x32xf32>
      %40 = arith.mulf %38, %39 : vector<2x32xf32>
      %41 = vector.shape_cast %30 : vector<2x1xi1> to vector<2x1xi1>
      %42 = vector.broadcast %41 : vector<2x1xi1> to vector<2x32xi1>
      %43 = arith.select %42, %37, %40 : vector<2x32xi1>, vector<2x32xf32>
      %c0_34 = arith.constant 0 : index
      %c0_35 = arith.constant 0 : index
      %44 = vector.load %arg4[%c0_34, %c0_35] : memref<2x32xf32, #tpu.memory_space<vmem>>, vector<2x32xf32>
      tpu.vector_store %arg4[%c0_34, %c0_35], %43 {strides = array<i32>} : memref<2x32xf32, #tpu.memory_space<vmem>>, vector<2x32xf32>,
    } else {
    }
    return
  }
  func.func @transform_0(%arg0: i32, %arg1: i32) -> (i32, i32, i32) {
    %c0_i32 = arith.constant 0 : i32
    %c0_i32_0 = arith.constant 0 : i32
    return %arg1, %c0_i32, %arg0 : i32, i32, i32
  }
  func.func @transform_1(%arg0: i32, %arg1: i32) -> (i32, i32, i32) {
    %c0_i32 = arith.constant 0 : i32
    %c0_i32_0 = arith.constant 0 : i32
    %c0_i32_1 = arith.constant 0 : i32
    return %arg1, %c0_i32, %c0_i32_0 : i32, i32, i32
  }
  func.func @transform_2(%arg0: i32, %arg1: i32) -> (i32, i32) {
    %c0_i32 = arith.constant 0 : i32
    %c0_i32_0 = arith.constant 0 : i32
    return %c0_i32, %arg0 : i32, i32
  }
}

</mosaic_0001>

<bundles_post_ra>
// kernel: tpu_custom_call.1
= control target key start
LH: loop header
LB: loop body
LE: loop exit
PB: predicated region body
PF: predicated region fallthrough
CT: control target
= control target key end

     0   :  { %vm19_vm0 = vcmask 1024   ;;  %v252_v1 = vmov 0   ;;  %v253_v2 = vmov 0.0   ;;  %s379_s0 = inlined_call_operand.vmem [shape: f32[8,2,32], index: 0, kind: input, shape index: {}]   ;;  %s380_s1 = inlined_call_operand.vmem [shape: s32[8,2,1], index: 1, kind: input, shape index: {}]   ;;  %s381_s2 = inlined_call_operand.hbm [shape: f32[2,32], index: 2, kind: output, shape index: {}]  }
   0x1   :  { %v31_v0 = vld [vmem:[%s380_s1 + $0x4] sm:$0x3]  ;;  %222 = vset.pattern.permute.xlu1 %v252_v1  ;;  %221 = vset.pattern.permute.xlu0 %v252_v1  ;;  %20 = vst.msk [vmem:[#allocation4] sm:$0x3] %vm19_vm0, %v253_v2  ;;  %v29_v3 = vld [vmem:[%s380_s1] sm:$0x3] }
   0x2   :  { %vm39_vm1 = vcmp.eq.s32.totalorder %v31_v0, 0  ;;  %vm37_vm2 = vcmp.eq.s32.totalorder %v29_v3, 0  ;;  %v32_v5 = vld [vmem:[%s380_s1 + $0x6] sm:$0x3]  ;;  %223 = vset.pattern.permute.xlu2 %v252_v1  ;;  %v30_v9 = vld [vmem:[%s380_s1 + $0x2] sm:$0x3] }
   0x3   :  { %v47_v4 = vsel %vm39_vm1, 1, %v252_v1  ;;  %v212_v6 = vsel %vm39_vm1, 1.0, %v253_v2  ;;  %v45_v7 = vsel %vm37_vm2, 1, %v252_v1  ;;  %v210_v8 = vsel %vm37_vm2, 1.0, %v253_v2  ;;  %v35_v13 = vld [vmem:[%s380_s1 + $0xc] sm:$0x3] }
   0x4   :  { %60 = vperm.xlu1 %222, %v47_v4   ;;  %vm40_vm3 = vcmp.eq.s32.totalorder %v32_v5, 0  ;;  %54 = vperm.xlu0 %221, %v45_v7   ;;  %v140_v10 = vsel %vm19_vm0, %v210_v8, 0.0  ;;  %vm38_vm4 = vcmp.eq.s32.totalorder %v30_v9, 0  ;;  %v143_v14 = vsel %vm19_vm0, %v212_v6, 0.0  ;;  %v33_v16 = vld [vmem:[%s380_s1 + $0x8] sm:$0x3] }
   0x5   :  { %v213_v11 = vsel %vm40_vm3, 1.0, %v253_v2  ;;  %v211_v12 = vsel %vm38_vm4, 1.0, %v253_v2  ;;  %v48_v17 = vsel %vm40_vm3, 1, %v252_v1  ;;  %v36_v20 = vld [vmem:[%s380_s1 + $0xe] sm:$0x3]  ;;  %v46_v22 = vsel %vm38_vm4, 1, %v252_v1 }
   0x6   :  { %v141_v15 = vsel %vm19_vm0, %v211_v12, 0.0  ;;  %v145_v18 = vsel %vm19_vm0, %v213_v11, 0.0  ;;  %v34_v21 = vld [vmem:[%s380_s1 + $0xa] sm:$0x3]  ;;  %vm43_vm5 = vcmp.eq.s32.totalorder %v35_v13, 0  ;;  %vm41_vm6 = vcmp.eq.s32.totalorder %v33_v16, 0 }
   0x7   :  { %v142_v19 = vadd.f32 %v141_v15, %v140_v10  ;;  %vm42_vm7 = vcmp.eq.s32.totalorder %v34_v21, 0  ;;  %v49_v24 = vsel %vm41_vm6, 1, %v252_v1  ;;  %v214_v25 = vsel %vm41_vm6, 1.0, %v253_v2 }
   0x8   :  { %v215_v26 = vsel %vm42_vm7, 1.0, %v253_v2 }
   0x9   :  { %v144_v23 = vadd.f32 %v143_v14, %v142_v19 }
   0xa   :  { %7 = vsyncpa [#allocation6], 0  ;;  %vm44_vm8 = vcmp.eq.s32.totalorder %v36_v20, 0  ;;  %66 = vperm.xlu2 %223, %v49_v24   ;;  %v147_v27 = vsel %vm19_vm0, %v214_v25, 0.0  ;;  %v216_v28 = vsel %vm43_vm5, 1.0, %v253_v2  ;;  %v149_v30 = vsel %vm19_vm0, %v215_v26, 0.0 }
   0xb   :  { %v146_v29 = vadd.f32 %v145_v18, %v144_v23  ;;  %v217_v31 = vsel %vm44_vm8, 1.0, %v253_v2  ;;  %v151_v33 = vsel %vm19_vm0, %v216_v28, 0.0  ;;  %v50_v35 = vsel %vm42_vm7, 1, %v252_v1  ;;  %v130_v40 = vld [vmem:[#allocation4] sm:$0x3]  ;;  %s201_s15 = sshll.u32 %s381_s2, 4  ;;  %s202_s15 = int_to_ptr.hbm [resolvable:$true] %s201_s15 }
   0xc   :  { %63 = vperm.xlu1 %222, %v48_v17   ;;  %57 = vperm.xlu0 %221, %v46_v22   ;;  %v52_v36 = vsel %vm44_vm8, 1, %v252_v1  ;;  %v153_v37 = vsel %vm19_vm0, %v217_v31, 0.0  ;;  %v51_v38 = vsel %vm43_vm5, 1, %v252_v1  ;;  %vm16_vm14 = vcmask 254976   ;;  %v21_v56 = vld [vmem:[%s379_s0] sm:$0x3] }
   0xd   :  { %v148_v32 = vadd.f32 %v147_v27, %v146_v29  ;;  %17 = vst.msk [vmem:[#allocation2] sm:$0x3] %vm16_vm14, %v253_v2  ;;  %v22_v57 = vld [vmem:[%s379_s0 + $0x2] sm:$0x3]  ;;  %v113_v58 = vsel %vm16_vm14, %v21_v56, 0.0 }
   0xe   :  { %18 = vst.msk [vmem:[#allocation3] sm:$0x3] %vm16_vm14, %v253_v2  ;;  %v23_v59 = vld [vmem:[%s379_s0 + $0x4] sm:$0x3]  ;;  %v114_v61 = vsel %vm16_vm14, %v22_v57, 0.0 }
   0xf   :  { %v150_v34 = vadd.f32 %v149_v30, %v148_v32  ;;  %v116_v60 = vsel %vm16_vm14, %v23_v59, 0.0  ;;  %v24_v62 = vld [vmem:[%s379_s0 + $0x6] sm:$0x3]  ;;  %v115_v63 = vadd.f32 %v114_v61, %v113_v58  ;;  %v26_v4 = vld [vmem:[%s379_s0 + $0xa] sm:$0x3] }
  0x10   :  { %v118_v0 = vsel %vm16_vm14, %v24_v62, 0.0  ;;  %v122_v6 = vsel %vm16_vm14, %v26_v4, 0.0  ;;  %v28_v8 = vld [vmem:[%s379_s0 + $0xe] sm:$0x3]  ;;  %v27_v9 = vld [vmem:[%s379_s0 + $0xc] sm:$0x3] }
  0x11   :  { %v152_v39 = vadd.f32 %v151_v33, %v150_v34  ;;  %v117_v2 = vadd.f32 %v116_v60, %v115_v63  ;;  %v126_v11 = vsel %vm16_vm14, %v28_v8, 0.0  ;;  %v124_v12 = vsel %vm16_vm14, %v27_v9, 0.0 }
  0x12   :  { %69 = vperm.xlu2 %223, %v50_v35  }
  0x13   :  { %v154_v41 = vadd.f32 %v153_v37, %v152_v39  ;;  %v119_v5 = vadd.f32 %v118_v0, %v117_v2 }
  0x14   :  { %75 = vperm.xlu1 %222, %v52_v36   ;;  %72 = vperm.xlu0 %221, %v51_v38  }
  0x15   :  { %v155_v42 = vadd.f32 %v154_v41, %v130_v40  ;;  %v112_v15 = vld [vmem:[#allocation3] sm:$0x3] }
  0x17   :  { %156 = vst.msk [vmem:[#allocation4] sm:$0x3] %vm19_vm0, %v155_v42 }
  0x1e   :  { %v160_v43 = vld [vmem:[#allocation4] sm:$0x3] }
  0x1f   :  { %vm161_vm9 = vcmp.gt.f32.partialorder %v160_v43, 0.0  ;;  %v163_v44 = vmax.f32 %v160_v43, 1.0 }
  0x20   :  { %v187_v45 = vsel %vm161_vm9, 1, %v252_v1  ;;  %v25_v1 = vld [vmem:[%s379_s0 + $0x8] sm:$0x3]  ;;  %s254_s0 = smov [#allocation5]  }
  0x21   :  { %224 = vrcp.f32 %v163_v44  ;;  %189 = vperm.xlu0 %221, %v187_v45   ;;  %v175_v48 = vand.u32 2147483648, %v163_v44  ;;  %vm169_vm10 = vweird.f32 %v163_v44  ;;  %v173_v50 = vand.u32 2147483647, %v163_v44  ;;  %s199_s12 = sshll.u32 %s254_s0, 4  ;;  %s200_s12 = int_to_ptr.vmem [resolvable:$true] %s199_s12 }
  0x22   :  { %v120_v3 = vsel %vm16_vm14, %v25_v1, 0.0 }
  0x23   :  { %v176_v52 = vor.u32 1.1754944e-38, %v175_v48  ;;  %vm174_vm13 = vcmp.eq.f32.partialorder %v173_v50, 8.507059e+37  ;;  %v121_v7 = vadd.f32 %v120_v3, %v119_v5 }
  0x25   :  { %v123_v10 = vadd.f32 %v122_v6, %v121_v7 }
  0x27   :  { %v225_v46 = vpop.eup %224  ;;  %v125_v13 = vadd.f32 %v124_v12, %v123_v10 }
  0x28   :  { %v165_v47 = vmul.f32 %v225_v46, %v163_v44  ;;  %vm170_vm11 = vweird.f32 %v225_v46 }
  0x29   :  { %vm171_vm12 = vmor %vm169_vm10, %vm170_vm11  ;;  %v127_v14 = vadd.f32 %v126_v11, %v125_v13 }
  0x2a   :  { %v166_v49 = vsub.f32 1.0, %v165_v47  ;;  %v93_v47 = vld [vmem:[#allocation2] sm:$0x3] }
  0x2b   :  { %v128_v16 = vadd.f32 %v127_v14, %v112_v15 }
  0x2c   :  { %v167_v51 = vmul.f32 %v225_v46, %v166_v49 }
  0x2d   :  { %129 = vst.msk [vmem:[#allocation3] sm:$0x3] %vm16_vm14, %v128_v16 }
  0x2e   :  { %v168_v53 = vadd.f32 %v225_v46, %v167_v51 }
  0x30   :  { %v172_v54 = vsel %vm171_vm12, %v225_v46, %v168_v53 }
  0x31   :  { %v177_v55 = vsel %vm174_vm13, %v176_v52, %v172_v54 }
  0x32   :  { %181 = vperm.xlu2 %223, %v177_v55  }
  0x34   :  { %v185_v50 = vld [vmem:[#allocation3] sm:$0x3] }
  0x35   :  { %v186_v52 = vmul.f32 0.125, %v185_v50 }
  0x64   :  { %v67_v18 = vpop.permute.xlu2 %66 }
  0x65   :  { %vm81_vm3 = vcmp.eq.s32.totalorder %v67_v18, 1 }
  0x66   :  { %v89_v31 = vsel %vm81_vm3, %v25_v1, 0.0 }
  0x67   :  { %v102_v38 = vsel %vm16_vm14, %v89_v31, 0.0 }
  0x6c   :  { %v70_v24 = vpop.permute.xlu2 %69 }
  0x6d   :  { %vm82_vm4 = vcmp.eq.s32.totalorder %v70_v24, 1 }
  0x6e   :  { %v90_v35 = vsel %vm82_vm4, %v26_v4, 0.0 }
  0x6f   :  { %v104_v41 = vsel %vm16_vm14, %v90_v35, 0.0 }
  0x76   :  { %v61_v17 = vpop.permute.xlu1 %60  ;;  %v55_v19 = vpop.permute.xlu0 %54 }
  0x77   :  { %vm77_vm15 = vcmp.eq.s32.totalorder %v55_v19, 1  ;;  %vm79_vm0 = vcmp.eq.s32.totalorder %v61_v17, 1 }
  0x78   :  { %v85_v21 = vsel %vm77_vm15, %v21_v56, 0.0  ;;  %v87_v23 = vsel %vm79_vm0, %v23_v59, 0.0 }
  0x79   :  { %v95_v26 = vsel %vm16_vm14, %v85_v21, 0.0  ;;  %v98_v30 = vsel %vm16_vm14, %v87_v23, 0.0 }
  0x7e   :  { %v64_v20 = vpop.permute.xlu1 %63  ;;  %v58_v22 = vpop.permute.xlu0 %57 }
  0x7f   :  { %vm80_vm1 = vcmp.eq.s32.totalorder %v64_v20, 1  ;;  %vm78_vm2 = vcmp.eq.s32.totalorder %v58_v22, 1 }
  0x80   :  { %v86_v25 = vsel %vm78_vm2, %v22_v57, 0.0  ;;  %v88_v28 = vsel %vm80_vm1, %v24_v62, 0.0 }
  0x81   :  { %v96_v27 = vsel %vm16_vm14, %v86_v25, 0.0  ;;  %v100_v33 = vsel %vm16_vm14, %v88_v28, 0.0 }
  0x82   :  { %v97_v29 = vadd.f32 %v96_v27, %v95_v26 }
  0x84   :  { %v99_v32 = vadd.f32 %v98_v30, %v97_v29 }
  0x86   :  { %v76_v34 = vpop.permute.xlu1 %75  ;;  %v101_v36 = vadd.f32 %v100_v33, %v99_v32  ;;  %v73_v37 = vpop.permute.xlu0 %72 }
  0x87   :  { %vm84_vm5 = vcmp.eq.s32.totalorder %v76_v34, 1  ;;  %vm83_vm6 = vcmp.eq.s32.totalorder %v73_v37, 1 }
  0x88   :  { %v91_v39 = vsel %vm83_vm6, %v27_v9, 0.0  ;;  %v103_v40 = vadd.f32 %v102_v38, %v101_v36  ;;  %v92_v42 = vsel %vm84_vm5, %v28_v8, 0.0 }
  0x89   :  { %v106_v44 = vsel %vm16_vm14, %v91_v39, 0.0  ;;  %v108_v46 = vsel %vm16_vm14, %v92_v42, 0.0 }
  0x8a   :  { %v105_v43 = vadd.f32 %v104_v41, %v103_v40 }
  0x8c   :  { %v107_v45 = vadd.f32 %v106_v44, %v105_v43  ;;  %v182_v53 = vpop.permute.xlu2 %181 }
  0x8e   :  { %v109_v48 = vadd.f32 %v108_v46, %v107_v45 }
  0x90   :  { %v110_v49 = vadd.f32 %v109_v48, %v93_v47 }
  0x92   :  { %111 = vst.msk [vmem:[#allocation2] sm:$0x3] %vm16_vm14, %v110_v49 }
  0x93   :  { %v190_v51 = vpop.permute.xlu0 %189 }
  0x94   :  { %vm191_vm7 = vcmp.eq.s32.totalorder %v190_v51, 1 }
  0x99   :  { %v162_v54 = vld [vmem:[#allocation2] sm:$0x3] }
  0x9a   :  { %v184_v55 = vmul.f32 %v182_v53, %v162_v54 }
  0x9c   :  { %v192_v56 = vsel %vm191_vm7, %v184_v55, %v186_v52 }
  0x9d   :  { %193 = vst.msk [vmem:[#allocation5] sm:$0x3] %vm16_vm14, %v192_v56 }
  0x9e   :  { %204 = dma.vmem_to_hbm [thread:$0]  %s200_s12, 32, %s202_s15, [#allocation6]  }
  0x9f   :  { %250 = dma.done.wait [#allocation6], 32  }
  0xa0   :  { %251 = vsyncadd [#allocation6], 4294967264 }
  0xa1   :  { %209 = vsyncpa [#allocation6], 1 }

</bundles_post_ra>
